<compile_context>
chip_gen: v6e
topology: v6e:2x2x1
jax: 0.10.0
libtpu: 0.0.40
codegen_flags: <defaults>
</compile_context>

<pallas_src>
import functools
import math

import jax
import jax.numpy as jnp
from jax.experimental import pallas as pl
from jax.experimental.pallas import tpu as pltpu

_MiB = 1024 * 1024


def _stripe_loss_kernel(pred_ref, targ_ref, out_ref, *,
                        shift, hw, w, horizontal, mask_rows, num_rows):
    p = pred_ref[...].astype(jnp.float32)        # (TB, L)
    t = targ_ref[...].astype(jnp.float32)        # (TB, L)
    tb, nl = p.shape

    diff = p - t
    sq = diff * diff                             # (TB, L)

    # rolled[:, i] = p[:, (i + L - shift) % L]  -> neighbour along H or W.
    rolled = pltpu.roll(p, shift, axis=1)
    grad = jnp.abs(p - rolled)

    # Lane keep-mask built in-kernel (no extra HBM input stream): drops the
    # wrap-around / cross-image-row / cross-slab pairs of the roll.
    lane = jax.lax.broadcasted_iota(jnp.int32, (1, nl), 1)
    if horizontal:
        keep = (lane % hw) < (hw - w)            # image rows h in [0, H-2]
    else:
        keep = (lane % w) != (w - 1)             # image cols w in [0, W-2]
    grad = jnp.where(keep, grad, 0.0)

    if mask_rows:
        # Ragged last grid block: zero contributions from padded (OOB) rows.
        row = (pl.program_id(0) * tb
               + jax.lax.broadcasted_iota(jnp.int32, (tb, 1), 0))
        valid = row < num_rows
        sq = jnp.where(valid, sq, 0.0)
        grad = jnp.where(valid, grad, 0.0)

    # Sublane (axis 0) reduction only: mostly VPU adds, keeps the XLU free for
    # the roll.  The tiny lane-axis reduction happens in plain JAX outside.
    out_ref[:, 0:1, :] = jnp.sum(sq, axis=0, keepdims=True)[None]
    out_ref[:, 1:2, :] = jnp.sum(grad, axis=0, keepdims=True)[None]


def _vmem_capacity_bytes():
    """Physical per-core VMEM (128 MiB on v5e/v6e, 64 MiB on v7x)."""
    try:
        cap = getattr(pltpu.get_tpu_info(), "vmem_capacity_bytes", None)
        if cap:
            return int(cap)
    except Exception:
        pass
    return 64 * _MiB   # conservative default (v7x-sized)


def _round_up(x, m):
    return ((x + m - 1) // m) * m


def _pick_packing(bc, hw):
    """Smallest k with (k*hw) % 128 == 0 and bc % k == 0; 1 if none exists."""
    k_base = 128 // math.gcd(hw, 128)
    if k_base == 1:
        return 1
    k = k_base
    while k <= bc:
        if bc % k == 0:
            return k
        k += k_base
    return 1


def _pick_block_rows(num_rows, row_bytes, sublane, target_bytes):
    """Rows per tile: multiple of `sublane` (or == num_rows), aim for >= 2 steps."""
    cap = max(1, int(target_bytes // max(int(row_bytes), 1)))
    tb = min(num_rows, cap)
    # Keep at least two grid steps so the "parallel" axis shards across both
    # v7x TensorCores; harmless on single-TC v5e/v6e.
    if tb >= num_rows and num_rows > sublane:
        tb = pl.cdiv(num_rows, 2)
    if tb < num_rows:
        tb = _round_up(tb, sublane)
    if tb >= num_rows:
        tb = num_rows
    return tb


def stripe_removal_loss(predictions, targets, alpha=1.0, direction="horizontal"):
    """JAX/Pallas equivalent of StripeRemovalLoss.forward. Returns scalar f32."""
    assert predictions.shape == targets.shape
    assert direction in ("horizontal", "vertical")
    N, C, H, W = predictions.shape
    BC, HW = N * C, H * W
    total = BC * HW
    itemsize = jnp.dtype(predictions.dtype).itemsize
    horizontal = direction == "horizontal"
    grad_count = N * C * (H - 1) * W if horizontal else N * C * H * (W - 1)

    # Pack k image slabs per lane row when HW isn't a multiple of 128; the
    # per-HW-segment keep mask makes the roll math identical across slabs.
    k = _pick_packing(BC, HW)
    R, L = BC // k, k * HW
    pred = predictions.reshape(R, L)     # free row-major relabel
    targ = targets.reshape(R, L)

    shift = (L - W) if horizontal else (L - 1)

    # Sublane packing multiple: 8 for f32, 16 for bf16, 32 for int8/fp8.
    sublane = 8 * max(1, 4 // itemsize)

    # Generation-aware tile / VMEM policy.
    vmem_cap = _vmem_capacity_bytes()
    target_tile_bytes = max(4 * _MiB, vmem_cap // 8)   # ~8 MiB v7x, ~16 MiB v5e/v6e

    TB = _pick_block_rows(R, L * itemsize, sublane, target_tile_bytes)
    G = pl.cdiv(R, TB)
    mask_rows = (R % TB) != 0
    tile_bytes = TB * L * itemsize

    # 2 inputs x 2 pipeline buffers x tile + merged output buffers + headroom.
    need = 4 * tile_bytes + 4 * 2 * L * 4 + 2 * _MiB
    vmem_limit = int(min(vmem_cap,
                         max(need,
                             min(int(0.8 * vmem_cap),
                                 max(32 * _MiB, 6 * tile_bytes)))))

    kernel = functools.partial(
        _stripe_loss_kernel, shift=shift, hw=HW, w=W, horizontal=horizontal,
        mask_rows=mask_rows, num_rows=R)

    cost = pl.CostEstimate(
        flops=8 * total,
        transcendentals=0,
        bytes_accessed=2 * total * itemsize + G * 2 * L * 4)

    parts = pl.pallas_call(
        kernel,
        out_shape=jax.ShapeDtypeStruct((G, 2, L), jnp.float32),
        grid_spec=pltpu.PrefetchScalarGridSpec(
            num_scalar_prefetch=0,
            grid=(G,),
            in_specs=[
                pl.BlockSpec((TB, L), lambda i: (i, 0)),
                pl.BlockSpec((TB, L), lambda i: (i, 0)),
            ],
            out_specs=pl.BlockSpec((1, 2, L), lambda i: (i, 0, 0)),
        ),
        compiler_params=pltpu.CompilerParams(
            dimension_semantics=("parallel",),
            vmem_limit_bytes=vmem_limit,
        ),
        cost_estimate=cost,
    )(pred, targ)

    sq_sum = jnp.sum(parts[:, 0, :])
    grad_sum = jnp.sum(parts[:, 1, :])

    mse_loss = sq_sum / jnp.float32(total)
    grad_penalty = grad_sum / jnp.float32(grad_count)
    return mse_loss + jnp.float32(alpha) * grad_penalty


def _reference(pred, targ, alpha, direction):
    p = pred.astype(jnp.float32)
    t = targ.astype(jnp.float32)
    mse = jnp.mean((p - t) ** 2)
    if direction == "horizontal":
        g = jnp.mean(jnp.abs(p[:, :, :-1, :] - p[:, :, 1:, :]))
    else:
        g = jnp.mean(jnp.abs(p[:, :, :, :-1] - p[:, :, :, 1:]))
    return mse + alpha * g


if __name__ == "__main__":
    key = jax.random.PRNGKey(0)

    cases = [
        # (N, C, H, W, dtype): covers f32/bf16, H != W, HW % 128 != 0
        # (slab packing) and a ragged last grid block (row-validity mask).
        (2, 4, 16, 16, jnp.float32),
        (4, 8, 16, 16, jnp.bfloat16),
        (5, 4, 16, 16, jnp.float32),   # BC = 20 -> ragged block, G = 2
        (4, 8, 10, 12, jnp.float32),   # HW = 120 -> 16 slabs packed per row
    ]

    for (N, C, H, W, dtype) in cases:
        key, k1, k2 = jax.random.split(key, 3)
        predictions = jax.random.normal(k1, (N, C, H, W),
                                        dtype=jnp.float32).astype(dtype)
        targets = jax.random.normal(k2, (N, C, H, W),
                                    dtype=jnp.float32).astype(dtype)
        for direction in ("horizontal", "vertical"):
            loss = stripe_removal_loss(predictions, targets, alpha=1.0,
                                       direction=direction)
            loss = jax.block_until_ready(loss)
            ref = _reference(predictions, targets, 1.0, direction)
            assert jnp.allclose(loss, ref, rtol=2e-4, atol=2e-5), (
                (N, C, H, W, str(dtype), direction), float(loss), float(ref))

    print("KERNEL_OK")
</pallas_src>

<mosaic_0001>
module attributes {stable_mosaic.version = 11 : i64} {
  func.func @_stripe_loss_kernel(%arg0: i32, %arg1: memref<8x256xf32, #tpu.memory_space<vmem>>, %arg2: memref<8x256xf32, #tpu.memory_space<vmem>>, %arg3: memref<1x2x256xf32, #tpu.memory_space<vmem>>) attributes {dimension_semantics = [#tpu.dimension_semantics<parallel>], iteration_bounds = array<i64: 1>, scalar_prefetch = 0 : i64, scratch_operands = 0 : i64, tpu.core_type = #tpu.core_type<tc>, window_params = [{transform_indices = @transform_0, window_bounds = array<i64: 8, 256>}, {transform_indices = @transform_1, window_bounds = array<i64: 8, 256>}, {transform_indices = @transform_2, window_bounds = array<i64: 1, 2, 256>}]} {
    %c0 = arith.constant 0 : index
    %c0_0 = arith.constant 0 : index
    %0 = vector.load %arg1[%c0, %c0_0] : memref<8x256xf32, #tpu.memory_space<vmem>>, vector<8x256xf32>
    %c0_1 = arith.constant 0 : index
    %c0_2 = arith.constant 0 : index
    %1 = vector.load %arg2[%c0_1, %c0_2] : memref<8x256xf32, #tpu.memory_space<vmem>>, vector<8x256xf32>
    %2 = arith.subf %0, %1 : vector<8x256xf32>
    %3 = arith.mulf %2, %2 : vector<8x256xf32>
    %c240_i32 = arith.constant 240 : i32
    %4 = tpu.dynamic_rotate %0 by %c240_i32 dim 1 : vector<8x256xf32>, i32 -> vector<8x256xf32>
    %5 = arith.subf %0, %4 : vector<8x256xf32>
    %6 = math.absf %5 : vector<8x256xf32>
    %7 = tpu.iota {dimensions = array<i32: 1>} : vector<1x256xi32>
    %c256_i32 = arith.constant 256 : i32
    %c0_i32 = arith.constant 0 : i32
    %8 = arith.cmpi eq, %c256_i32, %c0_i32 : i32
    %c1_i32 = arith.constant 1 : i32
    %9 = arith.select %8, %c1_i32, %c256_i32 : i32
    %10 = vector.broadcast %9 : i32 to vector<1x256xi32>
    %11 = arith.remsi %7, %10 : vector<1x256xi32>
    %c0_i32_3 = arith.constant 0 : i32
    %12 = vector.broadcast %c0_i32_3 : i32 to vector<1x256xi32>
    %13 = arith.cmpi ne, %11, %12 : vector<1x256xi32>
    %c0_i32_4 = arith.constant 0 : i32
    %14 = vector.broadcast %c0_i32_4 : i32 to vector<1x256xi32>
    %15 = arith.cmpi slt, %11, %14 : vector<1x256xi32>
    %c0_i32_5 = arith.constant 0 : i32
    %16 = arith.cmpi slt, %9, %c0_i32_5 : i32
    %17 = vector.broadcast %16 : i1 to vector<1x256xi1>
    %18 = vector.broadcast %17 : vector<1x256xi1> to vector<1x256xi1>
    %19 = arith.xori %15, %18 : vector<1x256xi1>
    %20 = arith.andi %19, %13 : vector<1x256xi1>
    %21 = vector.broadcast %9 : i32 to vector<1x256xi32>
    %22 = arith.addi %11, %21 : vector<1x256xi32>
    %23 = arith.select %20, %22, %11 : vector<1x256xi1>, vector<1x256xi32>
    %c240_i32_6 = arith.constant 240 : i32
    %24 = vector.broadcast %c240_i32_6 : i32 to vector<1x256xi32>
    %25 = arith.cmpi slt, %23, %24 : vector<1x256xi32>
    %cst = arith.constant 0.000000e+00 : f32
    %26 = vector.shape_cast %25 : vector<1x256xi1> to vector<1x256xi1>
    %27 = vector.broadcast %26 : vector<1x256xi1> to vector<8x256xi1>
    %28 = vector.broadcast %cst : f32 to vector<8x256xf32>
    %29 = arith.select %27, %6, %28 : vector<8x256xi1>, vector<8x256xf32>
    %cst_7 = arith.constant dense<0.000000e+00> : vector<256xf32>
    %30 = vector.multi_reduction <add>, %3, %cst_7 [0] : vector<8x256xf32> to vector<256xf32>
    %31 = vector.shape_cast %30 : vector<256xf32> to vector<1x256xf32>
    %32 = vector.shape_cast %31 : vector<1x256xf32> to vector<1x1x256xf32>
    %c0_8 = arith.constant 0 : index
    %c0_9 = arith.constant 0 : index
    %c0_10 = arith.constant 0 : index
    %33 = vector.load %arg3[%c0_8, %c0_9, %c0_10] : memref<1x2x256xf32, #tpu.memory_space<vmem>>, vector<1x1x256xf32>
    tpu.vector_store %arg3[%c0_8, %c0_9, %c0_10], %32 {strides = array<i32>} : memref<1x2x256xf32, #tpu.memory_space<vmem>>, vector<1x1x256xf32>,
    %cst_11 = arith.constant dense<0.000000e+00> : vector<256xf32>
    %34 = vector.multi_reduction <add>, %29, %cst_11 [0] : vector<8x256xf32> to vector<256xf32>
    %35 = vector.shape_cast %34 : vector<256xf32> to vector<1x256xf32>
    %36 = vector.shape_cast %35 : vector<1x256xf32> to vector<1x1x256xf32>
    %c0_12 = arith.constant 0 : index
    %c1 = arith.constant 1 : index
    %c0_13 = arith.constant 0 : index
    %37 = vector.load %arg3[%c0_12, %c1, %c0_13] : memref<1x2x256xf32, #tpu.memory_space<vmem>>, vector<1x1x256xf32>
    tpu.vector_store %arg3[%c0_12, %c1, %c0_13], %36 {strides = array<i32>} : memref<1x2x256xf32, #tpu.memory_space<vmem>>, vector<1x1x256xf32>,
    return
  }
  func.func @transform_0(%arg0: i32) -> (i32, i32) {
    %c0_i32 = arith.constant 0 : i32
    %c0_i32_0 = arith.constant 0 : i32
    return %arg0, %c0_i32 : i32, i32
  }
  func.func @transform_1(%arg0: i32) -> (i32, i32) {
    %c0_i32 = arith.constant 0 : i32
    %c0_i32_0 = arith.constant 0 : i32
    return %arg0, %c0_i32 : i32, i32
  }
  func.func @transform_2(%arg0: i32) -> (i32, i32, i32) {
    %c0_i32 = arith.constant 0 : i32
    %c0_i32_0 = arith.constant 0 : i32
    %c0_i32_1 = arith.constant 0 : i32
    return %arg0, %c0_i32, %c0_i32_0 : i32, i32, i32
  }
}

</mosaic_0001>

<bundles_post_ra>
// kernel: tpu_custom_call.1
= control target key start
LH: loop header
LB: loop body
LE: loop exit
PB: predicated region body
PF: predicated region fallthrough
CT: control target
= control target key end

     0   :  { %7 = vsyncpa [#allocation3], 0  ;;  %s281_s0 = inlined_call_operand.hbm [shape: f32[8,256], index: 0, kind: input, shape index: {}]   ;;  %s282_s1 = inlined_call_operand.hbm [shape: f32[8,256], index: 1, kind: input, shape index: {}]   ;;  %s283_s2 = inlined_call_operand.hbm [shape: f32[1,2,256], index: 2, kind: output, shape index: {}]  }
   0x1   :  { %8 = vsyncpa [#allocation6], 0 }
   0x2   :  { %9 = vsyncpa [#allocation4], 0  ;;  %s244_s9 = smov [#allocation2]   ;;  %s245_s11 = smov [#allocation5]  }
   0x3   :  { %s16_s10 = sshll.u32 %s244_s9, 4  ;;  %s26_s12 = sshll.u32 %s245_s11, 4  ;;  %s17_s10 = int_to_ptr.vmem [resolvable:$true] %s16_s10  ;;  %s27_s12 = int_to_ptr.vmem [resolvable:$true] %s26_s12 }
   0x4   :  { %s186_s13 = scalar_lea.vmem %s17_s10, 256  ;;  %p191_p1 = scmp.lt.s32.totalorder %s17_s10, %s17_s10 }
   0x5   :  { %p187_p0 = scmp.ne.s32.totalorder %s17_s10, %s186_s13  ;;  %p192_p2 = scmp.lt.s32.totalorder %s186_s13, %s186_s13 }
   0x7   :  { %p193_p3 = por %p192_p2, %p191_p1 }
   0x9   :  { %p194_p4 = pnand %p193_p3, %p187_p0 }
   0xb   :  { %197 = shalt.err (!%p194_p4)
}
   0xc   :  { %19 = dma.hbm_to_vmem [thread:$0]  %s281_s0, 256, %s17_s10, [#allocation3]  }
   0xd   :  { %s206_s16 = scalar_lea.vmem %s27_s12, 256  ;;  %p211_p6 = scmp.lt.s32.totalorder %s27_s12, %s27_s12 }
   0xe   :  { %p207_p5 = scmp.ne.s32.totalorder %s27_s12, %s206_s16  ;;  %p212_p7 = scmp.lt.s32.totalorder %s206_s16, %s206_s16 }
  0x10   :  { %p213_p8 = por %p212_p7, %p211_p6 }
  0x12   :  { %p214_p9 = pnand %p213_p8, %p207_p5 }
  0x14   :  { %217 = shalt.err (!%p214_p9)
}
  0x15   :  { %29 = dma.hbm_to_vmem [thread:$0]  %s282_s1, 256, %s27_s12, [#allocation6]  }
  0x16   :  { %238 = dma.done.wait [#allocation3], 256  }
  0x17   :  { %239 = vsyncadd [#allocation3], 4294967040 }
  0x18   :  { %240 = dma.done.wait [#allocation6], 256  }
  0x19   :  { %241 = vsyncadd [#allocation6], 4294967040  ;;  %v36_v0 = vld [vmem:[#allocation2] sm:$0xff]  ;;  %v38_v1 = vld [vmem:[#allocation5] sm:$0xff]  ;;  %s246_s19 = smov 112   ;;  %v48_v16 = vlaneseq  ;;  %s248_s0 = smov [#allocation7]  }
  0x1a   :  { %44 = vrot.lane.b32.xlu0 %v36_v0, %s246_s19  ;;  %v40_v2 = vsub.f32 %v36_v0, %v38_v1  ;;  %v37_v3 = vld [vmem:[#allocation2 + $0x8] sm:$0xff]  ;;  %v39_v4 = vld [vmem:[#allocation5 + $0x8] sm:$0xff]  ;;  %v247_v12 = vmov 1966171168   ;;  %s163_s1 = sshll.u32 %s248_s0, 4  ;;  %s164_s1 = int_to_ptr.vmem [resolvable:$true] %s163_s1 }
  0x1b   :  { %v41_v5 = vsub.f32 %v37_v3, %v39_v4  ;;  %v106_v13 = vunpack.c.l.s4 %v247_v12  ;;  %v109_v19 = vshrl.u32 %v48_v16, 7  ;;  %vm270_vm0 = vcmp.lt.s32.totalorder %v48_v16, 256  ;;  %s218_s20 = scalar_lea.vmem %s164_s1, 64  ;;  %p223_p11 = scmp.lt.s32.totalorder %s164_s1, %s164_s1 }
  0x1c   :  { %v42_v6 = vmul.f32 %v40_v2, %v40_v2  ;;  %v49_v30 = vand.u32 127, %v48_v16  ;;  %p219_p10 = scmp.ne.s32.totalorder %s164_s1, %s218_s20  ;;  %p224_p12 = scmp.lt.s32.totalorder %s218_s20, %s218_s20 }
  0x1d   :  { %v43_v7 = vmul.f32 %v41_v5, %v41_v5  ;;  %v107_v20 = vunpack.c.0.s8 %v106_v13 }
  0x1e   :  { %v90_v8 = vrot.slane %v42_v6, 4  ;;  %46 = vrot.lane.b32.xlu0 %v37_v3, %s246_s19  ;;  %v57_v31 = vadd.s32 128, %v49_v30  ;;  %vm50_vm1 = vcmp.lt.s32.totalorder %v49_v30, 112  ;;  %p225_p13 = por %p224_p12, %p223_p11 }
  0x1f   :  { %v96_v9 = vrot.slane %v43_v7, 4  ;;  %v110_v25 = vsub.s32 %v107_v20, %v109_v19 }
  0x20   :  { %v91_v10 = vadd.f32 %v90_v8, %v42_v6  ;;  %v69_v33 = vand.u32 255, %v57_v31  ;;  %p226_p0 = pnand %p225_p13, %p219_p10 }
  0x21   :  { %v97_v11 = vadd.f32 %v96_v9, %v43_v7 }
  0x22   :  { %v92_v14 = vrot.slane %v91_v10, 2  ;;  %vm83_vm2 = vcmp.lt.s32.totalorder %v69_v33, 240 }
  0x23   :  { %v98_v15 = vrot.slane %v97_v11, 2 }
  0x24   :  { %v93_v17 = vadd.f32 %v92_v14, %v91_v10 }
  0x25   :  { %v99_v18 = vadd.f32 %v98_v15, %v97_v11 }
  0x26   :  { %v94_v21 = vrot.slane %v93_v17, 1 }
  0x27   :  { %v100_v22 = vrot.slane %v99_v18, 1 }
  0x28   :  { %v95_v23 = vadd.f32 %v94_v21, %v93_v17 }
  0x29   :  { %v101_v24 = vadd.f32 %v100_v22, %v99_v18 }
  0x2b   :  { %v104_v26 = vcombine.low %v95_v23, %v101_v24 }
  0x2d   :  { %v111_v27 = vrot.slane %v104_v26, %v110_v25 }
  0x2f   :  { %v118_v29 = vrot.slane %v111_v27, %v110_v25 }
  0x31   :  { %124 = vst.msk [vmem:[#allocation7] ss:$2 sm:$0x3] %vm270_vm0, %v118_v29 }
  0x8c   :  { %v45_v32 = vpop.permute.xlu0 %44 }
  0x90   :  { %v47_v34 = vpop.permute.xlu0 %46 }
  0x91   :  { %v51_v35 = vsel %vm50_vm1, %v45_v32, %v47_v34  ;;  %v52_v36 = vsel %vm50_vm1, %v47_v34, %v45_v32 }
  0x92   :  { %v53_v37 = vsub.f32 %v36_v0, %v51_v35  ;;  %v54_v38 = vsub.f32 %v37_v3, %v52_v36 }
  0x94   :  { %v55_v39 = vand.u32 2147483647, %v53_v37  ;;  %v56_v40 = vand.u32 2147483647, %v54_v38 }
  0x96   :  { %v89_v41 = vsel %vm83_vm2, %v56_v40, 0.0  ;;  %v125_v42 = vrot.slane %v55_v39, 4 }
  0x97   :  { %v131_v43 = vrot.slane %v89_v41, 4 }
  0x98   :  { %v126_v44 = vadd.f32 %v125_v42, %v55_v39 }
  0x99   :  { %v132_v45 = vadd.f32 %v131_v43, %v89_v41 }
  0x9a   :  { %v127_v46 = vrot.slane %v126_v44, 2 }
  0x9b   :  { %v133_v47 = vrot.slane %v132_v45, 2 }
  0x9c   :  { %v128_v48 = vadd.f32 %v127_v46, %v126_v44 }
  0x9d   :  { %v134_v49 = vadd.f32 %v133_v47, %v132_v45 }
  0x9e   :  { %v129_v50 = vrot.slane %v128_v48, 1 }
  0x9f   :  { %v135_v51 = vrot.slane %v134_v49, 1 }
  0xa0   :  { %v130_v52 = vadd.f32 %v129_v50, %v128_v48 }
  0xa1   :  { %v136_v53 = vadd.f32 %v135_v51, %v134_v49 }
  0xa3   :  { %v139_v54 = vcombine.low %v130_v52, %v136_v53 }
  0xa5   :  { %v146_v55 = vrot.slane %v139_v54, %v110_v25 }
  0xa7   :  { %v153_v56 = vrot.slane %v146_v55, %v110_v25 }
  0xa9   :  { %156 = vst.msk [vmem:[#allocation7 + $0x1] ss:$2 sm:$0x3] %vm270_vm0, %v153_v56 }
  0xaa   :  { %229 = shalt.err (!%p226_p0)
}
  0xab   :  { %166 = dma.vmem_to_hbm [thread:$0]  %s164_s1, 64, %s283_s2, [#allocation4]  }
  0xac   :  { %242 = dma.done.wait [#allocation4], 64  }
  0xad   :  { %243 = vsyncadd [#allocation4], 4294967232 }
  0xae   :  { %170 = vsyncpa [#allocation3], 1 }
  0xaf   :  { %171 = vsyncpa [#allocation6], 1 }
  0xb0   :  { %172 = vsyncpa [#allocation4], 1 }

</bundles_post_ra>
